<compile_context>
chip_gen: v7x
topology: tpu7x:2x2x1
jax: 0.10.0
libtpu: 0.0.40
codegen_flags: <defaults>
</compile_context>

<pallas_src>
import functools

import jax
import jax.numpy as jnp
from jax.experimental import pallas as pl
from jax.experimental.pallas import tpu as pltpu


def _tv_kernel(x_ref, htv_ref, wtv_ref, *, w, hw, tbc, bc, mask_rows):
    # x_ref: (TBC, H*W) lane-dense block; one row per (batch, channel) plane.
    x = x_ref[...]

    if mask_rows:
        # Tail block reads past B*C: those rows are garbage (Pallas does no
        # zero-fill), so select them to zero before any arithmetic.
        row = pl.program_id(0) * tbc + jax.lax.broadcasted_iota(
            jnp.int32, (tbc, 1), 0
        )
        x = jnp.where(row < bc, x, jnp.zeros_like(x))

    # Column (lane) masks: built once from a (1, H*W) iota and broadcast over
    # the TBC rows — O(H*W) work instead of O(TBC*H*W).
    col = jax.lax.broadcasted_iota(jnp.int32, (1, hw), 1)
    h_keep = col < (hw - w)            # drop the wrapped last-W columns
    w_keep = (col % w) != (w - 1)      # drop row-seam columns (incl. wrap)

    # Neighbor diffs via lane rotation (positive shifts == jnp.roll(-w)/(-1)).
    # Diff in the input dtype (bf16-friendly on v6e/v7x), square/sum in f32.
    dh = (pltpu.roll(x, shift=hw - w, axis=1) - x).astype(jnp.float32)
    dw = (pltpu.roll(x, shift=hw - 1, axis=1) - x).astype(jnp.float32)
    dh = jnp.where(h_keep, dh, 0.0)
    dw = jnp.where(w_keep, dw, 0.0)

    h_part = jnp.sum(dh * dh)
    w_part = jnp.sum(dw * dw)

    # One full-tile (unmasked, lane-dense) store of the per-block partial;
    # the epilogue reads [:, 0, 0] and sums across blocks in plain JAX.
    htv_ref[...] = jnp.full(htv_ref.shape, h_part, jnp.float32)
    wtv_ref[...] = jnp.full(wtv_ref.shape, w_part, jnp.float32)


def tv_loss(
    x,
    tv_loss_weight=1.0,
    *,
    block_bytes=4 * 1024 * 1024,
    vmem_limit_bytes=48 * 1024 * 1024,
):
    """Total variation loss matching the PyTorch TVLoss.forward semantics.

    x: (B, C, H, W) array (float32 or bf16 — kept in its HBM dtype through
       the DMA; diffs computed in that dtype, squared/accumulated in f32).
    block_bytes / vmem_limit_bytes are safe defaults for v5e/v6e/v7x; on
    v6e/v5e (128 MiB VMEM) they can be raised for slightly better roofline.
    """
    b, c, h, w = x.shape
    bc, hw = b * c, h * w

    # Lane-dense view: last dim H*W maps to the 128-lane axis.
    x_flat = x.reshape(bc, hw)

    # Rows per grid step: fill ~block_bytes, rounded DOWN to a sublane
    # multiple (rounding down caps the block at the budget instead of
    # inflating it up to 8x for very wide rows), floored at one (8, ·) tile.
    bytes_per_row = hw * x_flat.dtype.itemsize
    tbc = max(8, (block_bytes // bytes_per_row) // 8 * 8)
    # TODO(synk): for huge single planes (8 rows >> block_bytes) add a second
    # grid axis tiling H*W in W-multiple chunks with a seam-correction term.

    # Prefer >= 4 grid steps when B*C allows (pipelining; megacore on v7x).
    rows_for_4 = (((bc + 3) // 4) + 7) // 8 * 8
    tbc = min(tbc, max(8, rows_for_4))
    tbc = min(tbc, (bc + 7) // 8 * 8)

    num_blocks = pl.cdiv(bc, tbc)
    # No host-side padding: the tail block (if any) is masked in-kernel.
    mask_rows = (num_blocks * tbc) != bc

    kernel = functools.partial(
        _tv_kernel, w=w, hw=hw, tbc=tbc, bc=bc, mask_rows=mask_rows
    )

    h_parts, w_parts = pl.pallas_call(
        kernel,
        out_shape=(
            jax.ShapeDtypeStruct((num_blocks, 8, 128), jnp.float32),
            jax.ShapeDtypeStruct((num_blocks, 8, 128), jnp.float32),
        ),
        grid_spec=pltpu.PrefetchScalarGridSpec(
            num_scalar_prefetch=0,
            grid=(num_blocks,),
            in_specs=[pl.BlockSpec((tbc, hw), lambda i: (i, 0))],
            out_specs=(
                pl.BlockSpec((1, 8, 128), lambda i: (i, 0, 0)),
                pl.BlockSpec((1, 8, 128), lambda i: (i, 0, 0)),
            ),
        ),
        compiler_params=pltpu.CompilerParams(
            dimension_semantics=("parallel",),      # megacore-shardable (v7x)
            vmem_limit_bytes=vmem_limit_bytes,
        ),
    )(x_flat)

    # Tiny second-pass reduction over per-block partials (plain JAX).
    h_tv = jnp.sum(h_parts[:, 0, 0])
    w_tv = jnp.sum(w_parts[:, 0, 0])

    count_h = c * (h - 1) * w
    count_w = c * h * (w - 1)
    return tv_loss_weight * 2.0 * (h_tv / count_h + w_tv / count_w) / b


def tv_loss_ref(x, tv_loss_weight=1.0):
    """Pure-JAX reference for validation."""
    b, c, h, w = x.shape
    count_h = c * (h - 1) * w
    count_w = c * h * (w - 1)
    h_tv = jnp.sum((x[:, :, 1:, :] - x[:, :, :-1, :]) ** 2)
    w_tv = jnp.sum((x[:, :, :, 1:] - x[:, :, :, :-1]) ** 2)
    return tv_loss_weight * 2.0 * (h_tv / count_h + w_tv / count_w) / b


if __name__ == "__main__":
    key = jax.random.PRNGKey(0)
    k0, k1 = jax.random.split(key)

    # Primary case: B*C a multiple of the sublane tile (fast path, no mask).
    x = jax.random.normal(k0, (2, 4, 16, 16), dtype=jnp.float32)
    out = jax.block_until_ready(tv_loss(x, tv_loss_weight=1.0))
    ref = tv_loss_ref(x, tv_loss_weight=1.0)
    assert jnp.allclose(out, ref, rtol=1e-5, atol=1e-5), (out, ref)

    # Tail-masking path: B*C = 9 is not a multiple of 8, exercising the
    # in-kernel row mask that replaced the host-side jnp.pad.
    x2 = jax.random.normal(k1, (3, 3, 16, 16), dtype=jnp.float32)
    out2 = jax.block_until_ready(tv_loss(x2, tv_loss_weight=1.0))
    ref2 = tv_loss_ref(x2, tv_loss_weight=1.0)
    assert jnp.allclose(out2, ref2, rtol=1e-5, atol=1e-5), (out2, ref2)

    print("KERNEL_OK")
</pallas_src>

<mosaic_0001>
module attributes {stable_mosaic.version = 11 : i64} {
  func.func @_tv_kernel(%arg0: i32, %arg1: memref<8x256xf32, #tpu.memory_space<vmem>>, %arg2: memref<1x8x128xf32, #tpu.memory_space<vmem>>, %arg3: memref<1x8x128xf32, #tpu.memory_space<vmem>>) attributes {dimension_semantics = [#tpu.dimension_semantics<parallel>], iteration_bounds = array<i64: 1>, scalar_prefetch = 0 : i64, scratch_operands = 0 : i64, tpu.core_type = #tpu.core_type<tc>, window_params = [{transform_indices = @transform_0, window_bounds = array<i64: 8, 256>}, {transform_indices = @transform_1, window_bounds = array<i64: 1, 8, 128>}, {transform_indices = @transform_2, window_bounds = array<i64: 1, 8, 128>}]} {
    %c0 = arith.constant 0 : index
    %c0_0 = arith.constant 0 : index
    %0 = vector.load %arg1[%c0, %c0_0] : memref<8x256xf32, #tpu.memory_space<vmem>>, vector<8x256xf32>
    %1 = tpu.iota {dimensions = array<i32: 1>} : vector<1x256xi32>
    %c240_i32 = arith.constant 240 : i32
    %2 = vector.broadcast %c240_i32 : i32 to vector<1x256xi32>
    %3 = arith.cmpi slt, %1, %2 : vector<1x256xi32>
    %c16_i32 = arith.constant 16 : i32
    %c0_i32 = arith.constant 0 : i32
    %4 = arith.cmpi eq, %c16_i32, %c0_i32 : i32
    %c1_i32 = arith.constant 1 : i32
    %5 = arith.select %4, %c1_i32, %c16_i32 : i32
    %6 = vector.broadcast %5 : i32 to vector<1x256xi32>
    %7 = arith.remsi %1, %6 : vector<1x256xi32>
    %c0_i32_1 = arith.constant 0 : i32
    %8 = vector.broadcast %c0_i32_1 : i32 to vector<1x256xi32>
    %9 = arith.cmpi ne, %7, %8 : vector<1x256xi32>
    %c0_i32_2 = arith.constant 0 : i32
    %10 = vector.broadcast %c0_i32_2 : i32 to vector<1x256xi32>
    %11 = arith.cmpi slt, %7, %10 : vector<1x256xi32>
    %c0_i32_3 = arith.constant 0 : i32
    %12 = arith.cmpi slt, %5, %c0_i32_3 : i32
    %13 = vector.broadcast %12 : i1 to vector<1x256xi1>
    %14 = vector.broadcast %13 : vector<1x256xi1> to vector<1x256xi1>
    %15 = arith.xori %11, %14 : vector<1x256xi1>
    %16 = arith.andi %15, %9 : vector<1x256xi1>
    %17 = vector.broadcast %5 : i32 to vector<1x256xi32>
    %18 = arith.addi %7, %17 : vector<1x256xi32>
    %19 = arith.select %16, %18, %7 : vector<1x256xi1>, vector<1x256xi32>
    %c15_i32 = arith.constant 15 : i32
    %20 = vector.broadcast %c15_i32 : i32 to vector<1x256xi32>
    %21 = arith.cmpi ne, %19, %20 : vector<1x256xi32>
    %c240_i32_4 = arith.constant 240 : i32
    %22 = tpu.dynamic_rotate %0 by %c240_i32_4 dim 1 : vector<8x256xf32>, i32 -> vector<8x256xf32>
    %23 = arith.subf %22, %0 : vector<8x256xf32>
    %c255_i32 = arith.constant 255 : i32
    %24 = tpu.dynamic_rotate %0 by %c255_i32 dim 1 : vector<8x256xf32>, i32 -> vector<8x256xf32>
    %25 = arith.subf %24, %0 : vector<8x256xf32>
    %cst = arith.constant 0.000000e+00 : f32
    %26 = vector.shape_cast %3 : vector<1x256xi1> to vector<1x256xi1>
    %27 = vector.broadcast %26 : vector<1x256xi1> to vector<8x256xi1>
    %28 = vector.broadcast %cst : f32 to vector<8x256xf32>
    %29 = arith.select %27, %23, %28 : vector<8x256xi1>, vector<8x256xf32>
    %cst_5 = arith.constant 0.000000e+00 : f32
    %30 = vector.shape_cast %21 : vector<1x256xi1> to vector<1x256xi1>
    %31 = vector.broadcast %30 : vector<1x256xi1> to vector<8x256xi1>
    %32 = vector.broadcast %cst_5 : f32 to vector<8x256xf32>
    %33 = arith.select %31, %25, %32 : vector<8x256xi1>, vector<8x256xf32>
    %34 = arith.mulf %29, %29 : vector<8x256xf32>
    %35 = vector.shape_cast %34 : vector<8x256xf32> to vector<1x8x256xf32>
    %cst_6 = arith.constant dense<0.000000e+00> : vector<1xf32>
    %36 = vector.multi_reduction <add>, %35, %cst_6 [1, 2] : vector<1x8x256xf32> to vector<1xf32>
    %37 = vector.shape_cast %36 : vector<1xf32> to vector<1x1x1xf32>
    %38 = vector.extract %37[0, 0, 0] : f32 from vector<1x1x1xf32>
    %39 = arith.mulf %33, %33 : vector<8x256xf32>
    %40 = vector.shape_cast %39 : vector<8x256xf32> to vector<1x8x256xf32>
    %cst_7 = arith.constant dense<0.000000e+00> : vector<1xf32>
    %41 = vector.multi_reduction <add>, %40, %cst_7 [1, 2] : vector<1x8x256xf32> to vector<1xf32>
    %42 = vector.shape_cast %41 : vector<1xf32> to vector<1x1x1xf32>
    %43 = vector.extract %42[0, 0, 0] : f32 from vector<1x1x1xf32>
    %44 = vector.broadcast %38 : f32 to vector<1x8x128xf32>
    %c0_8 = arith.constant 0 : index
    %c0_9 = arith.constant 0 : index
    %c0_10 = arith.constant 0 : index
    %45 = vector.load %arg2[%c0_8, %c0_9, %c0_10] : memref<1x8x128xf32, #tpu.memory_space<vmem>>, vector<1x8x128xf32>
    tpu.vector_store %arg2[%c0_8, %c0_9, %c0_10], %44 {strides = array<i32>} : memref<1x8x128xf32, #tpu.memory_space<vmem>>, vector<1x8x128xf32>,
    %46 = vector.broadcast %43 : f32 to vector<1x8x128xf32>
    %c0_11 = arith.constant 0 : index
    %c0_12 = arith.constant 0 : index
    %c0_13 = arith.constant 0 : index
    %47 = vector.load %arg3[%c0_11, %c0_12, %c0_13] : memref<1x8x128xf32, #tpu.memory_space<vmem>>, vector<1x8x128xf32>
    tpu.vector_store %arg3[%c0_11, %c0_12, %c0_13], %46 {strides = array<i32>} : memref<1x8x128xf32, #tpu.memory_space<vmem>>, vector<1x8x128xf32>,
    return
  }
  func.func @transform_0(%arg0: i32) -> (i32, i32) {
    %c0_i32 = arith.constant 0 : i32
    %c0_i32_0 = arith.constant 0 : i32
    return %arg0, %c0_i32 : i32, i32
  }
  func.func @transform_1(%arg0: i32) -> (i32, i32, i32) {
    %c0_i32 = arith.constant 0 : i32
    %c0_i32_0 = arith.constant 0 : i32
    %c0_i32_1 = arith.constant 0 : i32
    return %arg0, %c0_i32, %c0_i32_0 : i32, i32, i32
  }
  func.func @transform_2(%arg0: i32) -> (i32, i32, i32) {
    %c0_i32 = arith.constant 0 : i32
    %c0_i32_0 = arith.constant 0 : i32
    %c0_i32_1 = arith.constant 0 : i32
    return %arg0, %c0_i32, %c0_i32_0 : i32, i32, i32
  }
}

</mosaic_0001>

<bundles_post_ra>
// kernel: tpu_custom_call.1
= control target key start
LH: loop header
LB: loop body
LE: loop exit
PB: predicated region body
PF: predicated region fallthrough
CT: control target
= control target key end

     0   :  { %8 = vsyncpa [#allocation3], 0  ;;  %s288_s0 = inlined_call_operand.hbm [shape: f32[8,256], index: 0, kind: input, shape index: {}]   ;;  %s289_s1 = inlined_call_operand.hbm [shape: f32[1,8,128], index: 1, kind: output, shape index: {0}]   ;;  %s290_s2 = inlined_call_operand.hbm [shape: f32[1,8,128], index: 2, kind: output, shape index: {1}]  }
   0x1   :  { %9 = vsyncpa [#allocation4], 0 }
   0x2   :  { %10 = vsyncpa [#allocation7], 0  ;;  %s225_s9 = smov [#allocation2]   ;;  %s153_s13 = scalar_lea.hbm %s288_s0, 256 }
   0x3   :  { %s17_s10 = sshll.u32 %s225_s9, 4  ;;  %p154_p0 = scmp.ne.s32.totalorder %s288_s0, %s153_s13  ;;  %s18_s10 = int_to_ptr.vmem [resolvable:$true] %s17_s10 }
   0x4   :  { %p157_p1 = scmp.lt.u32.totalorder %s153_s13, %s288_s0 }
   0x6   :  { %p159_p2 = pnand %p157_p1, %p154_p0 }
   0x8   :  { %162 = shalt.err (!%p159_p2)
}
   0x9   :  { %s163_s18 = scalar_lea.vmem %s18_s10, 256  ;;  %p168_p4 = scmp.lt.s32.totalorder %s18_s10, %s18_s10 }
   0xa   :  { %p164_p3 = scmp.ne.s32.totalorder %s18_s10, %s163_s18  ;;  %p169_p5 = scmp.lt.s32.totalorder %s163_s18, %s163_s18 }
   0xc   :  { %p170_p6 = por %p169_p5, %p168_p4 }
   0xe   :  { %p171_p7 = pnand %p170_p6, %p164_p3 }
  0x10   :  { %174 = shalt.err (!%p171_p7)
}
  0x11   :  { %20 = dma.hbm_to_vmem [thread:$0]  %s288_s0, 256, %s18_s10, [#allocation3]  }
  0x12   :  { %219 = dma.done.wait [#allocation3], 256  }
  0x13   :  { %220 = vsyncadd [#allocation3], 4294967040  ;;  %v24_v0 = vld [vmem:[#allocation2] sm:$0xff]  ;;  %s226_s21 = smov 127   ;;  %s227_s22 = smov 112   ;;  %v25_v1 = vld [vmem:[#allocation2 + $0x8] sm:$0xff]  ;;  %v26_v2 = vlaneseq }
  0x14   :  { %66 = vrot.lane.b32.xlu1 %v24_v0, %s226_s21  ;;  %57 = vrot.lane.b32.xlu0 %v24_v0, %s227_s22  ;;  %s228_s0 = smov [#allocation5]   ;;  %s229_s24 = smov [#allocation6]  }
  0x15   :  { %v27_v3 = vand.u32 127, %v26_v2  ;;  %s121_s23 = sshll.u32 %s228_s0, 4  ;;  %s131_s25 = sshll.u32 %s229_s24, 4  ;;  %s122_s23 = int_to_ptr.vmem [resolvable:$true] %s121_s23  ;;  %s257_s25 = int_to_ptr.vmem [resolvable:$true] %s131_s25 }
  0x16   :  { %s175_s28 = scalar_lea.vmem %s122_s23, 128  ;;  %p180_p9 = scmp.lt.s32.totalorder %s122_s23, %s122_s23 }
  0x17   :  { %v28_v4 = vadd.s32 128, %v27_v3  ;;  %v35_v7 = vand.u32 15, %v27_v3  ;;  %vm70_vm0 = vcmp.lt.s32.totalorder %v27_v3, 127  ;;  %vm61_vm1 = vcmp.lt.s32.totalorder %v27_v3, 112  ;;  %p176_p8 = scmp.ne.s32.totalorder %s122_s23, %s175_s28  ;;  %p181_p10 = scmp.lt.s32.totalorder %s175_s28, %s175_s28 }
  0x18   :  { %68 = vrot.lane.b32.xlu1 %v25_v1, %s226_s21  ;;  %59 = vrot.lane.b32.xlu0 %v25_v1, %s227_s22 }
  0x19   :  { %v42_v8 = vand.u32 15, %v28_v4  ;;  %vm55_vm2 = vcmp.ne.s32.totalorder %v35_v7, 15  ;;  %vm30_vm4 = vcmp.lt.s32.totalorder %v28_v4, 240  ;;  %p182_p11 = por %p181_p10, %p180_p9 }
  0x1b   :  { %vm56_vm3 = vcmp.ne.s32.totalorder %v42_v8, 15  ;;  %p183_p12 = pnand %p182_p11, %p176_p8 }
  0x86   :  { %v67_v5 = vpop.permute.xlu1 %66  ;;  %v58_v6 = vpop.permute.xlu0 %57 }
  0x8a   :  { %v69_v9 = vpop.permute.xlu1 %68  ;;  %v60_v10 = vpop.permute.xlu0 %59 }
  0x8b   :  { %v71_v11 = vsel %vm70_vm0, %v67_v5, %v69_v9  ;;  %v72_v12 = vsel %vm70_vm0, %v69_v9, %v67_v5  ;;  %v62_v13 = vsel %vm61_vm1, %v58_v6, %v60_v10  ;;  %v63_v14 = vsel %vm61_vm1, %v60_v10, %v58_v6 }
  0x8c   :  { %v73_v15 = vsub.f32 %v71_v11, %v24_v0  ;;  %v74_v16 = vsub.f32 %v72_v12, %v25_v1  ;;  %v64_v17 = vsub.f32 %v62_v13, %v24_v0  ;;  %v65_v18 = vsub.f32 %v63_v14, %v25_v1 }
  0x8e   :  { %v87_v19 = vmul.f32 %v64_v17, %v64_v17  ;;  %v85_v20 = vsel %vm55_vm2, %v73_v15, 0.0  ;;  %v86_v21 = vsel %vm56_vm3, %v74_v16, 0.0  ;;  %v80_v22 = vsel %vm30_vm4, %v65_v18, 0.0 }
  0x8f   :  { %v99_v23 = vmul.f32 %v85_v20, %v85_v20  ;;  %v100_v24 = vmul.f32 %v86_v21, %v86_v21  ;;  %v88_v25 = vmul.f32 %v80_v22, %v80_v22 }
  0x91   :  { %v101_v26 = vadd.f32 %v100_v24, %v99_v23  ;;  %v89_v27 = vadd.f32 %v88_v25, %v87_v19 }
  0x93   :  { %102 = vadd.xlane.f32.xlu1 %v101_v26  ;;  %90 = vadd.xlane.f32.xlu0 %v89_v27 }
 0x120   :  { %v103_v28 = vpop.xlane.xlu1 %102  ;;  %v91_v29 = vpop.xlane.xlu0 %90 }
 0x121   :  { %v104_v30 = vrot.slane %v103_v28, 4  ;;  %v92_v31 = vrot.slane %v91_v29, 4 }
 0x123   :  { %v105_v32 = vadd.f32 %v104_v30, %v103_v28  ;;  %v93_v33 = vadd.f32 %v92_v31, %v91_v29 }
 0x125   :  { %v106_v34 = vrot.slane %v105_v32, 2  ;;  %v94_v35 = vrot.slane %v93_v33, 2 }
 0x127   :  { %v107_v36 = vadd.f32 %v106_v34, %v105_v32  ;;  %v95_v37 = vadd.f32 %v94_v35, %v93_v33 }
 0x129   :  { %v96_v38 = vrot.slane %v95_v37, 1  ;;  %v108_v39 = vrot.slane %v107_v36, 1 }
 0x12b   :  { %v97_v40 = vadd.f32 %v96_v38, %v95_v37  ;;  %v109_v41 = vadd.f32 %v108_v39, %v107_v36 }
 0x12d   :  { %144 = vpush %v97_v40 }
 0x12e   :  { %146 = vpush %v109_v41 }
 0x15e   :  { %s145_s26 = spop %144 }
 0x15f   :  { %v111_v42 = vstv %s145_s26  ;;  %s147_s27 = spop %146 }
 0x160   :  { %112 = vst [vmem:[#allocation5] sm:$0xff] %v111_v42  ;;  %v113_v43 = vstv %s147_s27 }
 0x161   :  { %114 = vst [vmem:[#allocation6] sm:$0xff] %v113_v43 }
 0x162   :  { %186 = shalt.err (!%p183_p12)
}
 0x163   :  { %s187_s3 = scalar_lea.hbm %s289_s1, 128 }
 0x164   :  { %p188_p13 = scmp.ne.s32.totalorder %s289_s1, %s187_s3  ;;  %p191_p0 = scmp.lt.u32.totalorder %s187_s3, %s289_s1 }
 0x166   :  { %p193_p1 = pnand %p191_p0, %p188_p13 }
 0x168   :  { %196 = shalt.err (!%p193_p1)
}
 0x169   :  { %124 = dma.vmem_to_hbm [thread:$0]  %s122_s23, 128, %s289_s1, [#allocation4]  }
 0x16a   :  { %s197_s10 = scalar_lea.vmem %s257_s25, 128  ;;  %p202_p3 = scmp.lt.s32.totalorder %s257_s25, %s257_s25 }
 0x16b   :  { %p198_p2 = scmp.ne.s32.totalorder %s257_s25, %s197_s10  ;;  %p203_p4 = scmp.lt.s32.totalorder %s197_s10, %s197_s10 }
 0x16d   :  { %p204_p5 = por %p203_p4, %p202_p3 }
 0x16f   :  { %p205_p6 = pnand %p204_p5, %p198_p2 }
 0x171   :  { %208 = shalt.err (!%p205_p6)
}
 0x172   :  { %s209_s13 = scalar_lea.hbm %s290_s2, 128 }
 0x173   :  { %p210_p7 = scmp.ne.s32.totalorder %s290_s2, %s209_s13  ;;  %p213_p8 = scmp.lt.u32.totalorder %s209_s13, %s290_s2 }
 0x175   :  { %p215_p9 = pnand %p213_p8, %p210_p7 }
 0x177   :  { %218 = shalt.err (!%p215_p9)
}
 0x178   :  { %134 = dma.vmem_to_hbm [thread:$0]  %s257_s25, 128, %s290_s2, [#allocation7]  }
 0x179   :  { %221 = dma.done.wait [#allocation4], 128  }
 0x17a   :  { %222 = vsyncadd [#allocation4], 4294967168 }
 0x17b   :  { %223 = dma.done.wait [#allocation7], 128  }
 0x17c   :  { %224 = vsyncadd [#allocation7], 4294967168 }
 0x17d   :  { %141 = vsyncpa [#allocation3], 1 }
 0x17e   :  { %142 = vsyncpa [#allocation4], 1 }
 0x17f   :  { %143 = vsyncpa [#allocation7], 1 }

</bundles_post_ra>
